<compile_context>
chip_gen: v6e
topology: v6e:2x2x1
jax: 0.10.0
libtpu: 0.0.40
codegen_flags: <defaults>
</compile_context>

<pallas_src>
import math
import jax
import jax.numpy as jnp
from jax.experimental import pallas as pl
from jax.experimental.pallas import tpu as pltpu


def ffn_kernel(x_ref, w1_ref, b1_ref, w2_ref, b2_ref, o_ref):
    # x_ref:  (tm, d_model)  bf16
    # w1_ref: (d_model, tf)  bf16      b1_ref: (1, tf)      f32
    # w2_ref: (tf, d_model)  bf16      b2_ref: (1, d_model) f32
    # o_ref:  (tm, d_model)  f32 (resident across the d_ff axis -> accumulator)
    k = pl.program_id(1)
    nk = pl.num_programs(1)

    # Linear1 slab (MXU, bf16 operands, f32 accumulate) + bias + ReLU.
    h = jnp.dot(x_ref[...], w1_ref[...], preferred_element_type=jnp.float32)
    h = jnp.maximum(h + b1_ref[...], 0.0)
    # TODO(synk): training-mode dropout would mask `h` here; eval mode is identity.

    # Linear2 slab contribution; fold the output bias into the last slab only.
    contrib = jnp.dot(h.astype(jnp.bfloat16), w2_ref[...],
                      preferred_element_type=jnp.float32)
    contrib = contrib + jnp.where(k == nk - 1, b2_ref[...],
                                  jnp.zeros_like(b2_ref[...]))

    @pl.when(k == 0)
    def _():
        o_ref[...] = contrib

    @pl.when(k != 0)
    def _():
        o_ref[...] = o_ref[...] + contrib


def _round_up(x, m):
    return ((x + m - 1) // m) * m


def _vmem_capacity_bytes():
    """Physical per-core VMEM (v5e/v6e: 128 MiB, v7x: 64 MiB); conservative fallback."""
    try:
        cap = getattr(pltpu.get_tpu_info(), "vmem_capacity_bytes", None)
    except Exception:
        cap = None
    return int(cap) if cap else (64 << 20)


def _fits_vmem(tm, tf, d_model, budget):
    """Approximate per-step VMEM footprint (double-buffered tiles + intermediates)."""
    weights = 2 * (d_model * tf + tf * d_model) * 2      # bf16 W1 + W2 slabs (x2 buffers)
    io = 2 * tm * d_model * (2 + 4)                      # bf16 x tile + f32 out tile (x2)
    bias = 2 * (tf + d_model) * 4
    inter = tm * tf * (4 + 2)                            # h in f32 + bf16 cast scratch
    return weights + io + bias + inter <= budget


def feed_forward(x, w1, b1, w2, b2, *, tm_max=512, tf_max=None):
    """x: (batch, seq, d_model) float32. Returns same shape/dtype.

    Weights may be pre-cast to bf16 by the caller (preferred: avoids an extra
    full-weight HBM round trip per call)."""
    batch, seq, d_model = x.shape
    d_ff = w1.shape[1]
    M = batch * seq

    assert d_model % 128 == 0, "d_model must be a multiple of 128 (lane)"
    assert d_ff % 128 == 0, "d_ff must be a multiple of 128 (lane)"

    w1b = w1 if w1.dtype == jnp.bfloat16 else w1.astype(jnp.bfloat16)
    w2b = w2 if w2.dtype == jnp.bfloat16 else w2.astype(jnp.bfloat16)
    b1_2d = b1.reshape(1, d_ff).astype(jnp.float32)
    b2_2d = b2.reshape(1, d_model).astype(jnp.float32)

    # Generation-aware VMEM budget.
    vmem_cap = _vmem_capacity_bytes()
    vmem_limit = int(vmem_cap * 0.85)      # headroom for compiler-internal scratch
    budget = int(vmem_limit * 0.75)        # tiling budget with slack inside the limit

    # Row tile: as large as possible (arithmetic intensity ~ tm FLOP per weight
    # byte when d_ff must be tiled).  Pad M up to the tile instead of shrinking it.
    tm = max(8, (min(tm_max, _round_up(M, 8)) // 8) * 8)

    # d_ff tile: prefer the full d_ff (weights resident for the whole call, no
    # reduction traffic); otherwise the largest 128-multiple divisor that fits.
    cap_tf = d_ff if tf_max is None else max(128, min(tf_max, d_ff))
    tf = None
    for cand in range(d_ff, 0, -128):
        if cand > cap_tf or d_ff % cand != 0:
            continue
        if _fits_vmem(tm, cand, d_model, budget):
            tf = cand
            break
    if tf is None:                         # last resort: shrink the row tile
        tf = 128
        while tm > 8 and not _fits_vmem(tm, tf, d_model, budget):
            tm = max(8, (tm // 2 // 8) * 8)

    # Pad the token dimension up to a whole number of row tiles.
    M_pad = _round_up(M, tm)
    x2d = x.reshape(M, d_model).astype(jnp.bfloat16)
    if M_pad != M:
        x2d = jnp.pad(x2d, ((0, M_pad - M), (0, 0)))

    grid = (M_pad // tm, d_ff // tf)

    cost = pl.CostEstimate(
        flops=4 * M_pad * d_model * d_ff,                 # two matmuls
        transcendentals=0,
        bytes_accessed=(x2d.size * 2 + w1b.size * 2 + w2b.size * 2
                        + b1_2d.size * 4 + b2_2d.size * 4
                        + M_pad * d_model * 4),
    )

    out = pl.pallas_call(
        ffn_kernel,
        out_shape=jax.ShapeDtypeStruct((M_pad, d_model), jnp.float32),
        grid_spec=pltpu.PrefetchScalarGridSpec(
            num_scalar_prefetch=0,
            grid=grid,
            in_specs=[
                pl.BlockSpec((tm, d_model), lambda i, k: (i, 0)),   # x row tile
                pl.BlockSpec((d_model, tf), lambda i, k: (0, k)),   # W1 slab
                pl.BlockSpec((1, tf),       lambda i, k: (0, k)),   # b1 slab
                pl.BlockSpec((tf, d_model), lambda i, k: (k, 0)),   # W2 slab
                pl.BlockSpec((1, d_model),  lambda i, k: (0, 0)),   # b2
            ],
            out_specs=pl.BlockSpec((tm, d_model), lambda i, k: (i, 0)),
        ),
        compiler_params=pltpu.CompilerParams(
            dimension_semantics=("parallel", "arbitrary"),
            vmem_limit_bytes=vmem_limit),
        cost_estimate=cost,
    )(x2d, w1b, b1_2d, w2b, b2_2d)

    return out[:M].reshape(batch, seq, d_model).astype(x.dtype)


def init_linear_params(key, in_features, out_features):
    """Deterministic init matching nn.Linear's default U(-1/sqrt(fan_in), ...)."""
    kw, kb = jax.random.split(key)
    bound = 1.0 / math.sqrt(in_features)
    # Stored already transposed: (in_features, out_features) so kernel does x @ W.
    w = jax.random.uniform(kw, (in_features, out_features),
                           minval=-bound, maxval=bound, dtype=jnp.float32)
    b = jax.random.uniform(kb, (out_features,),
                           minval=-bound, maxval=bound, dtype=jnp.float32)
    return w, b


if __name__ == "__main__":
    key = jax.random.PRNGKey(0)
    k_x, k_l1, k_l2 = jax.random.split(key, 3)

    # Small but lane-dense shapes (d_model, d_ff multiples of 128).
    batch, seq, d_model, d_ff = 2, 128, 128, 256

    x = jax.random.normal(k_x, (batch, seq, d_model), dtype=jnp.float32)
    w1, b1 = init_linear_params(k_l1, d_model, d_ff)
    w2, b2 = init_linear_params(k_l2, d_ff, d_model)

    # Pre-cast the weights to bf16 once (not per call).
    w1b = w1.astype(jnp.bfloat16)
    w2b = w2.astype(jnp.bfloat16)

    # Path 1: weights fully resident (single d_ff step).
    out = jax.block_until_ready(feed_forward(x, w1b, b1, w2b, b2))

    # Reference with matching bf16-operand / f32-accumulate precision
    # (eval-mode dropout == identity).
    xb = x.reshape(-1, d_model).astype(jnp.bfloat16)
    h_ref = jnp.dot(xb, w1b, preferred_element_type=jnp.float32) + b1
    h_ref = jnp.maximum(h_ref, 0.0)
    ref = jnp.dot(h_ref.astype(jnp.bfloat16), w2b,
                  preferred_element_type=jnp.float32) + b2
    ref = ref.reshape(batch, seq, d_model)
    assert jnp.allclose(out, ref, atol=2e-2, rtol=2e-2), "mismatch vs reference"

    # Sanity vs. full f32 reference (looser tolerance: bf16 MXU operands).
    ref32 = (jnp.maximum(x.reshape(-1, d_model) @ w1 + b1, 0.0) @ w2
             + b2).reshape(batch, seq, d_model)
    assert jnp.allclose(out, ref32, atol=1e-1, rtol=1e-1), "f32 sanity mismatch"

    # Path 2: force d_ff tiling to exercise in-place o_ref accumulation.
    out_tiled = jax.block_until_ready(
        feed_forward(x, w1b, b1, w2b, b2, tf_max=128))
    assert jnp.allclose(out_tiled, ref, atol=2e-2, rtol=2e-2), "tiled-path mismatch"

    # Path 3: token count that isn't a tile multiple exercises the row-padding path.
    x_odd = x[:, :99, :]
    out_odd = jax.block_until_ready(feed_forward(x_odd, w1b, b1, w2b, b2))
    assert jnp.allclose(out_odd, ref[:, :99, :], atol=2e-2, rtol=2e-2), \
        "padded-path mismatch"

    print("KERNEL_OK")
</pallas_src>

<mosaic_0001>
module attributes {stable_mosaic.version = 11 : i64} {
  func.func @ffn_kernel(%arg0: i32, %arg1: i32, %arg2: memref<256x128xbf16, #tpu.memory_space<vmem>>, %arg3: memref<128x256xbf16, #tpu.memory_space<vmem>>, %arg4: memref<1x256xf32, #tpu.memory_space<vmem>>, %arg5: memref<256x128xbf16, #tpu.memory_space<vmem>>, %arg6: memref<1x128xf32, #tpu.memory_space<vmem>>, %arg7: memref<256x128xf32, #tpu.memory_space<vmem>>) attributes {dimension_semantics = [#tpu.dimension_semantics<parallel>, #tpu.dimension_semantics<arbitrary>], iteration_bounds = array<i64: 1, 1>, scalar_prefetch = 0 : i64, scratch_operands = 0 : i64, tpu.core_type = #tpu.core_type<tc>, window_params = [{transform_indices = @transform_0, window_bounds = array<i64: 256, 128>}, {transform_indices = @transform_1, window_bounds = array<i64: 128, 256>}, {transform_indices = @transform_2, window_bounds = array<i64: 1, 256>}, {transform_indices = @transform_3, window_bounds = array<i64: 256, 128>}, {pipeline_mode = #tpu.pipeline_mode<synchronous>, transform_indices = @transform_4, window_bounds = array<i64: 1, 128>}, {transform_indices = @transform_5, window_bounds = array<i64: 256, 128>}]} {
    %c0 = arith.constant 0 : index
    %c0_0 = arith.constant 0 : index
    %0 = vector.load %arg2[%c0, %c0_0] : memref<256x128xbf16, #tpu.memory_space<vmem>>, vector<256x128xbf16>
    %c0_1 = arith.constant 0 : index
    %c0_2 = arith.constant 0 : index
    %1 = vector.load %arg3[%c0_1, %c0_2] : memref<128x256xbf16, #tpu.memory_space<vmem>>, vector<128x256xbf16>
    %cst = arith.constant dense<0.000000e+00> : vector<256x256xf32>
    %2 = tpu.matmul %0, %1, %cst {dimension_numbers = #tpu.dot_dimension_numbers<[1], [0], [0], [1], [0, 0, 1, 1], [], []>} : vector<256x128xbf16>, vector<128x256xbf16>, vector<256x256xf32> -> vector<256x256xf32>
    %c0_3 = arith.constant 0 : index
    %c0_4 = arith.constant 0 : index
    %3 = vector.load %arg4[%c0_3, %c0_4] : memref<1x256xf32, #tpu.memory_space<vmem>>, vector<1x256xf32>
    %4 = vector.broadcast %3 : vector<1x256xf32> to vector<256x256xf32>
    %5 = arith.addf %2, %4 : vector<256x256xf32>
    %cst_5 = arith.constant 0.000000e+00 : f32
    %6 = vector.broadcast %cst_5 : f32 to vector<256x256xf32>
    %7 = arith.maximumf %5, %6 : vector<256x256xf32>
    %8 = arith.truncf %7 : vector<256x256xf32> to vector<256x256xbf16>
    %c0_6 = arith.constant 0 : index
    %c0_7 = arith.constant 0 : index
    %9 = vector.load %arg5[%c0_6, %c0_7] : memref<256x128xbf16, #tpu.memory_space<vmem>>, vector<256x128xbf16>
    %cst_8 = arith.constant dense<0.000000e+00> : vector<256x128xf32>
    %10 = tpu.matmul %8, %9, %cst_8 {dimension_numbers = #tpu.dot_dimension_numbers<[1], [0], [0], [1], [0, 0, 1, 1], [], []>} : vector<256x256xbf16>, vector<256x128xbf16>, vector<256x128xf32> -> vector<256x128xf32>
    %c0_i32 = arith.constant 0 : i32
    %11 = arith.cmpi eq, %arg1, %c0_i32 : i32
    %c0_9 = arith.constant 0 : index
    %c0_10 = arith.constant 0 : index
    %12 = vector.load %arg6[%c0_9, %c0_10] : memref<1x128xf32, #tpu.memory_space<vmem>>, vector<1x128xf32>
    %cst_11 = arith.constant 0.000000e+00 : f32
    %13 = vector.broadcast %cst_11 : f32 to vector<1x128xf32>
    %14 = arith.select %11, %12, %13 : vector<1x128xf32>
    %15 = vector.broadcast %14 : vector<1x128xf32> to vector<256x128xf32>
    %16 = arith.addf %10, %15 : vector<256x128xf32>
    %c0_i32_12 = arith.constant 0 : i32
    %17 = arith.cmpi eq, %arg1, %c0_i32_12 : i32
    %18 = arith.extui %17 : i1 to i32
    %c0_i32_13 = arith.constant 0 : i32
    %19 = arith.cmpi ne, %18, %c0_i32_13 : i32
    scf.if %19 {
      %c0_16 = arith.constant 0 : index
      %c0_17 = arith.constant 0 : index
      %23 = vector.load %arg7[%c0_16, %c0_17] : memref<256x128xf32, #tpu.memory_space<vmem>>, vector<256x128xf32>
      tpu.vector_store %arg7[%c0_16, %c0_17], %16 {strides = array<i32>} : memref<256x128xf32, #tpu.memory_space<vmem>>, vector<256x128xf32>,
    } else {
    }
    %c0_i32_14 = arith.constant 0 : i32
    %20 = arith.cmpi ne, %arg1, %c0_i32_14 : i32
    %21 = arith.extui %20 : i1 to i32
    %c0_i32_15 = arith.constant 0 : i32
    %22 = arith.cmpi ne, %21, %c0_i32_15 : i32
    scf.if %22 {
      %c0_16 = arith.constant 0 : index
      %c0_17 = arith.constant 0 : index
      %23 = vector.load %arg7[%c0_16, %c0_17] : memref<256x128xf32, #tpu.memory_space<vmem>>, vector<256x128xf32>
      %24 = arith.addf %23, %16 : vector<256x128xf32>
      %c0_18 = arith.constant 0 : index
      %c0_19 = arith.constant 0 : index
      %25 = vector.load %arg7[%c0_18, %c0_19] : memref<256x128xf32, #tpu.memory_space<vmem>>, vector<256x128xf32>
      tpu.vector_store %arg7[%c0_18, %c0_19], %24 {strides = array<i32>} : memref<256x128xf32, #tpu.memory_space<vmem>>, vector<256x128xf32>,
    } else {
    }
    return
  }
  func.func @transform_0(%arg0: i32, %arg1: i32) -> (i32, i32) {
    %c0_i32 = arith.constant 0 : i32
    %c0_i32_0 = arith.constant 0 : i32
    return %arg0, %c0_i32 : i32, i32
  }
  func.func @transform_1(%arg0: i32, %arg1: i32) -> (i32, i32) {
    %c0_i32 = arith.constant 0 : i32
    %c0_i32_0 = arith.constant 0 : i32
    return %c0_i32, %arg1 : i32, i32
  }
  func.func @transform_2(%arg0: i32, %arg1: i32) -> (i32, i32) {
    %c0_i32 = arith.constant 0 : i32
    %c0_i32_0 = arith.constant 0 : i32
    return %c0_i32, %arg1 : i32, i32
  }
  func.func @transform_3(%arg0: i32, %arg1: i32) -> (i32, i32) {
    %c0_i32 = arith.constant 0 : i32
    %c0_i32_0 = arith.constant 0 : i32
    return %arg1, %c0_i32 : i32, i32
  }
  func.func @transform_4(%arg0: i32, %arg1: i32) -> (i32, i32) {
    %c0_i32 = arith.constant 0 : i32
    %c0_i32_0 = arith.constant 0 : i32
    %c0_i32_1 = arith.constant 0 : i32
    return %c0_i32, %c0_i32_0 : i32, i32
  }
  func.func @transform_5(%arg0: i32, %arg1: i32) -> (i32, i32) {
    %c0_i32 = arith.constant 0 : i32
    %c0_i32_0 = arith.constant 0 : i32
    return %arg0, %c0_i32 : i32, i32
  }
}

</mosaic_0001>

<bundles_post_ra>
// kernel: tpu_custom_call.1
= control target key start
LH: loop header
LB: loop body
LE: loop exit
PB: predicated region body
PF: predicated region fallthrough
CT: control target
= control target key end

     0   :  { %10 = vsyncpa [#allocation3], 0  ;;  %s1535_s0 = inlined_call_operand.hbm [shape: bf16[256,128], index: 0, kind: input, shape index: {}]   ;;  %s1536_s1 = inlined_call_operand.hbm [shape: bf16[128,256], index: 1, kind: input, shape index: {}]   ;;  %s1537_s2 = inlined_call_operand.vmem [shape: f32[1,256], index: 2, kind: input, shape index: {}]   ;;  %s1538_s3 = inlined_call_operand.hbm [shape: bf16[256,128], index: 3, kind: input, shape index: {}]   ;;  %s1539_s4 = inlined_call_operand.vmem [shape: f32[1,128], index: 4, kind: input, shape index: {}]   ;;  %s1540_s5 = inlined_call_operand.hbm [shape: f32[256,128], index: 5, kind: output, shape index: {}]  }
   0x1   :  { %11 = vsyncpa [#allocation6], 0 }
   0x2   :  { %12 = vsyncpa [#allocation4], 0  ;;  %s1354_s18 = smov [#allocation5]  }
   0x3   :  { %s30_s19 = sshll.u32 %s1354_s18, 4  ;;  %s31_s19 = int_to_ptr.vmem [resolvable:$true] %s30_s19 }
   0x4   :  { %s1276_s20 = scalar_lea.vmem %s31_s19, 2048  ;;  %p1281_p1 = scmp.lt.s32.totalorder %s31_s19, %s31_s19 }
   0x5   :  { %p1277_p0 = scmp.ne.s32.totalorder %s31_s19, %s1276_s20  ;;  %p1282_p2 = scmp.lt.s32.totalorder %s1276_s20, %s1276_s20 }
   0x7   :  { %p1283_p3 = por %p1282_p2, %p1281_p1 }
   0x9   :  { %p1284_p4 = pnand %p1283_p3, %p1277_p0 }
   0xb   :  { %1287 = shalt.err (!%p1284_p4)
}
   0xc   :  { %s1355_s21 = smov 128   ;;  %s1356_s22 = smov 8  }
   0xd   :  { %36 = dma.hbm_to_vmem [thread:$0]  %s1536_s1, 2048, %s31_s19, [#allocation6], %s1355_s21, %s1355_s21, %s1356_s22  }
   0xe   :  { %s1357_s25 = smov [#allocation2]  }
   0xf   :  { %s18_s26 = sshll.u32 %s1357_s25, 4  ;;  %s19_s26 = int_to_ptr.vmem [resolvable:$true] %s18_s26 }
  0x10   :  { %s1296_s27 = scalar_lea.vmem %s19_s26, 2048  ;;  %p1301_p6 = scmp.lt.s32.totalorder %s19_s26, %s19_s26 }
  0x11   :  { %p1297_p5 = scmp.ne.s32.totalorder %s19_s26, %s1296_s27  ;;  %p1302_p7 = scmp.lt.s32.totalorder %s1296_s27, %s1296_s27 }
  0x13   :  { %p1303_p8 = por %p1302_p7, %p1301_p6 }
  0x15   :  { %p1304_p9 = pnand %p1303_p8, %p1297_p5 }
  0x17   :  { %1307 = shalt.err (!%p1304_p9)
}
  0x18   :  { %s1358_s28 = smov 64   ;;  %s1359_s29 = smov 4  }
  0x19   :  { %24 = dma.hbm_to_vmem [thread:$0]  %s1535_s0, 2048, %s19_s26, [#allocation3], %s1358_s28, %s1358_s28, %s1359_s29  }
  0x1a   :  { %s1360_s7 = smov [#allocation7]  }
  0x1b   :  { %s44_s8 = sshll.u32 %s1360_s7, 4  ;;  %s45_s8 = int_to_ptr.vmem [resolvable:$true] %s44_s8 }
  0x1c   :  { %s1316_s1 = scalar_lea.vmem %s45_s8, 2048  ;;  %p1321_p11 = scmp.lt.s32.totalorder %s45_s8, %s45_s8 }
  0x1d   :  { %p1317_p10 = scmp.ne.s32.totalorder %s45_s8, %s1316_s1  ;;  %p1322_p12 = scmp.lt.s32.totalorder %s1316_s1, %s1316_s1 }
  0x1f   :  { %p1323_p13 = por %p1322_p12, %p1321_p11 }
  0x21   :  { %p1324_p0 = pnand %p1323_p13, %p1317_p10 }
  0x23   :  { %1327 = shalt.err (!%p1324_p0)
}
  0x24   :  { %50 = dma.hbm_to_vmem [thread:$0]  %s1538_s3, 2048, %s45_s8, [#allocation6], %s1358_s28, %s1358_s28, %s1359_s29  }
  0x25   :  { %1348 = dma.done.wait [#allocation3], 2048  }
  0x26   :  { %1349 = vsyncadd [#allocation3], 4294965248 }
  0x27   :  { %1350 = dma.done.wait [#allocation6], 4096  }
  0x28   :  { %1351 = vsyncadd [#allocation6], 4294963200  ;;  %v1361_v0 = vmov 0   ;;  %v1212_v1 = vld [vmem:[#allocation5 + $0x74] ss:$8 sps:$4 sm:$0xff]   ;;  %v1236_v18 = vld [vmem:[#allocation2] sm:$0xff]   ;;  %v113_v49 = vlaneseq }
  0x29   :  { %331 = vmatprep.mubr.bf16.mxu0 %v1361_v0  ;;  %v1214_v2 = vld [vmem:[#allocation5 + $0x70] ss:$8 sps:$4 sm:$0xff]   ;;  %299 = vmatprep.subr.bf16.mxu0 %v1212_v1  ;;  %v1215_v3 = vld [vmem:[#allocation5 + $0x64] ss:$8 sps:$4 sm:$0xff]   ;;  %v1217_v4 = vld [vmem:[#allocation5 + $0x60] ss:$8 sps:$4 sm:$0xff]  }
  0x2a   :  { %300 = vmatpush1.bf16.msra.mxu0 %v1214_v2  ;;  %v1218_v5 = vld [vmem:[#allocation5 + $0x54] ss:$8 sps:$4 sm:$0xff]   ;;  %v1220_v6 = vld [vmem:[#allocation5 + $0x50] ss:$8 sps:$4 sm:$0xff]   ;;  %v1221_v7 = vld [vmem:[#allocation5 + $0x44] ss:$8 sps:$4 sm:$0xff]  }
  0x2b   :  { %301 = vmatprep.subr.bf16.mxu0 %v1215_v3  ;;  %v1223_v8 = vld [vmem:[#allocation5 + $0x40] ss:$8 sps:$4 sm:$0xff]   ;;  %v1224_v9 = vld [vmem:[#allocation5 + $0x34] ss:$8 sps:$4 sm:$0xff]   ;;  %v1226_v10 = vld [vmem:[#allocation5 + $0x30] ss:$8 sps:$4 sm:$0xff]  }
  0x2c   :  { %v1227_v11 = vld [vmem:[#allocation5 + $0x24] ss:$8 sps:$4 sm:$0xff]   ;;  %v1229_v12 = vld [vmem:[#allocation5 + $0x20] ss:$8 sps:$4 sm:$0xff]   ;;  %v1230_v13 = vld [vmem:[#allocation5 + $0x14] ss:$8 sps:$4 sm:$0xff]  }
  0x2d   :  { %v1232_v14 = vld [vmem:[#allocation5 + $0x10] ss:$8 sps:$4 sm:$0xff]   ;;  %v1233_v15 = vld [vmem:[#allocation5 + $0x4] ss:$8 sps:$4 sm:$0xff]   ;;  %v1235_v16 = vld [vmem:[#allocation5] ss:$8 sps:$4 sm:$0xff]  }
  0x2e   :  { %302 = vmatpush1.bf16.msra.mxu0 %v1217_v4  ;;  %v1252_v17 = vld [vmem:[#allocation7 + $0x78] sm:$0xff]   ;;  %v1254_v20 = vld [vmem:[#allocation7 + $0x70] sm:$0xff]   ;;  %v1256_v22 = vld [vmem:[#allocation7 + $0x68] sm:$0xff]   ;;  %v114_v50 = vshrl.u32 %v113_v49, 7 }
  0x2f   :  { %303 = vmatprep.subr.bf16.mxu0 %v1218_v5  ;;  %v1253_v19 = vld [vmem:[#allocation7 + $0x38] sm:$0xff]   ;;  %1091 = vmatprep.subr.bf16.mxu1 %v1252_v17  ;;  %v1255_v21 = vld [vmem:[#allocation7 + $0x30] sm:$0xff]   ;;  %v1257_v23 = vld [vmem:[#allocation7 + $0x28] sm:$0xff]  }
  0x30   :  { %1092 = vmatpush3.bf16.msra.mxu1 %v1253_v19  ;;  %v1258_v24 = vld [vmem:[#allocation7 + $0x60] sm:$0xff]   ;;  %v1237_v25 = vld [vmem:[#allocation2 + $0x8] sm:$0xff]   ;;  %v1260_v27 = vld [vmem:[#allocation7 + $0x58] sm:$0xff]   ;;  %v119_v51 = vsub.s32 1, %v114_v50  ;;  %v115_v52 = vsub.s32 0, %v114_v50 }
  0x31   :  { %1093 = vmatprep.subr.bf16.mxu1 %v1254_v20  ;;  %v1259_v26 = vld [vmem:[#allocation7 + $0x20] sm:$0xff]   ;;  %v1261_v28 = vld [vmem:[#allocation7 + $0x18] sm:$0xff]   ;;  %v1238_v29 = vld [vmem:[#allocation2 + $0x10] sm:$0xff]  }
  0x32   :  { %304 = vmatpush1.bf16.msra.mxu0 %v1220_v6  ;;  %v1239_v30 = vld [vmem:[#allocation2 + $0x18] sm:$0xff]   ;;  %v1240_v31 = vld [vmem:[#allocation2 + $0x20] sm:$0xff]   ;;  %v1241_v32 = vld [vmem:[#allocation2 + $0x28] sm:$0xff]  }
  0x33   :  { %305 = vmatprep.subr.bf16.mxu0 %v1221_v7  ;;  %v1242_v33 = vld [vmem:[#allocation2 + $0x30] sm:$0xff]   ;;  %v1243_v34 = vld [vmem:[#allocation2 + $0x38] sm:$0xff]   ;;  %v1244_v35 = vld [vmem:[#allocation2 + $0x40] sm:$0xff]  }
  0x34   :  { %1094 = vmatpush3.bf16.msra.mxu1 %v1255_v21  ;;  %v1262_v36 = vld [vmem:[#allocation7 + $0x50] sm:$0xff]   ;;  %v1245_v38 = vld [vmem:[#allocation2 + $0x48] sm:$0xff]   ;;  %v1266_v41 = vld [vmem:[#allocation7 + $0x40] sm:$0xff]  }
  0x35   :  { %1095 = vmatprep.subr.bf16.mxu1 %v1256_v22  ;;  %v1263_v37 = vld [vmem:[#allocation7 + $0x10] sm:$0xff]   ;;  %v1264_v39 = vld [vmem:[#allocation7 + $0x48] sm:$0xff]   ;;  %v1267_v42 = vld [vmem:[#allocation7] sm:$0xff]  }
  0x36   :  { %306 = vmatpush1.bf16.msra.mxu0 %v1223_v8  ;;  %v1265_v40 = vld [vmem:[#allocation7 + $0x8] sm:$0xff]   ;;  %v1246_v43 = vld [vmem:[#allocation2 + $0x50] sm:$0xff]   ;;  %v1247_v44 = vld [vmem:[#allocation2 + $0x58] sm:$0xff]  }
  0x37   :  { %307 = vmatprep.subr.bf16.mxu0 %v1224_v9  ;;  %v1248_v45 = vld [vmem:[#allocation2 + $0x60] sm:$0xff]   ;;  %v1249_v46 = vld [vmem:[#allocation2 + $0x68] sm:$0xff]   ;;  %v1250_v47 = vld [vmem:[#allocation2 + $0x70] sm:$0xff]  }
  0x38   :  { %1096 = vmatpush3.bf16.msra.mxu1 %v1257_v23  ;;  %v1251_v48 = vld [vmem:[#allocation2 + $0x78] sm:$0xff]   ;;  %v111_v53 = vld [vmem:[%s1537_s2] sm:$0x3] }
  0x39   :  { %1097 = vmatprep.subr.bf16.mxu1 %v1258_v24  ;;  %v1424_v55 = vrot.slane %v111_v53, %v119_v51  ;;  %v1426_v56 = vrot.slane %v111_v53, %v115_v52 }
  0x3a   :  { %308 = vmatpush1.bf16.msra.mxu0 %v1226_v10 }
  0x3b   :  { %309 = vmatprep.subr.bf16.mxu0 %v1227_v11 }
  0x3c   :  { %1098 = vmatpush3.bf16.msra.mxu1 %v1259_v26 }
  0x3d   :  { %1099 = vmatprep.subr.bf16.mxu1 %v1260_v27 }
  0x3e   :  { %310 = vmatpush1.bf16.msra.mxu0 %v1229_v12 }
  0x3f   :  { %311 = vmatprep.subr.bf16.mxu0 %v1230_v13 }
  0x40   :  { %1100 = vmatpush3.bf16.msra.mxu1 %v1261_v28 }
  0x41   :  { %1101 = vmatprep.subr.bf16.mxu1 %v1262_v36 }
  0x42   :  { %312 = vmatpush1.bf16.msra.mxu0 %v1232_v14 }
  0x43   :  { %313 = vmatprep.subr.bf16.mxu0 %v1233_v15 }
  0x44   :  { %1102 = vmatpush3.bf16.msra.mxu1 %v1263_v37 }
  0x45   :  { %1103 = vmatprep.subr.bf16.mxu1 %v1264_v39 }
  0x46   :  { %314 = vmatpush1.bf16.msra.mxu0 %v1235_v16 }
  0x48   :  { %1104 = vmatpush3.bf16.msra.mxu1 %v1265_v40 }
  0x49   :  { %332 = vmatmul.mubr.bf16.vlgmr.msra.gmra.mxu0 %v1236_v18  ;;  %1105 = vmatprep.subr.bf16.mxu1 %v1266_v41 }
  0x4a   :  { %341 = vmatprep.mubr.bf16.mxu0 %v1361_v0 }
  0x4c   :  { %1106 = vmatpush3.bf16.msra.mxu1 %v1267_v42 }
  0x51   :  { %342 = vmatmul.mubr.bf16.gmra.mxu0 %v1237_v25 }
  0x52   :  { %351 = vmatprep.mubr.bf16.mxu0 %v1361_v0 }
  0x59   :  { %352 = vmatmul.mubr.bf16.gmra.mxu0 %v1238_v29 }
  0x5a   :  { %361 = vmatprep.mubr.bf16.mxu0 %v1361_v0 }
  0x61   :  { %362 = vmatmul.mubr.bf16.gmra.mxu0 %v1239_v30 }
  0x62   :  { %371 = vmatprep.mubr.bf16.mxu0 %v1361_v0 }
  0x69   :  { %372 = vmatmul.mubr.bf16.gmra.mxu0 %v1240_v31 }
  0x6a   :  { %381 = vmatprep.mubr.bf16.mxu0 %v1361_v0 }
  0x71   :  { %382 = vmatmul.mubr.bf16.gmra.mxu0 %v1241_v32 }
  0x72   :  { %391 = vmatprep.mubr.bf16.mxu0 %v1361_v0 }
  0x79   :  { %392 = vmatmul.mubr.bf16.gmra.mxu0 %v1242_v33 }
  0x7a   :  { %401 = vmatprep.mubr.bf16.mxu0 %v1361_v0 }
  0x81   :  { %402 = vmatmul.mubr.bf16.gmra.mxu0 %v1243_v34 }
  0x82   :  { %411 = vmatprep.mubr.bf16.mxu0 %v1361_v0 }
  0x89   :  { %412 = vmatmul.mubr.bf16.gmra.mxu0 %v1244_v35 }
  0x8a   :  { %421 = vmatprep.mubr.bf16.mxu0 %v1361_v0 }
  0x91   :  { %422 = vmatmul.mubr.bf16.gmra.mxu0 %v1245_v38 }
  0x92   :  { %431 = vmatprep.mubr.bf16.mxu0 %v1361_v0 }
  0x99   :  { %432 = vmatmul.mubr.bf16.gmra.mxu0 %v1246_v43 }
  0x9a   :  { %441 = vmatprep.mubr.bf16.mxu0 %v1361_v0 }
  0xa1   :  { %442 = vmatmul.mubr.bf16.gmra.mxu0 %v1247_v44 }
  0xa2   :  { %451 = vmatprep.mubr.bf16.mxu0 %v1361_v0 }
  0xa9   :  { %452 = vmatmul.mubr.bf16.gmra.mxu0 %v1248_v45 }
  0xaa   :  { %461 = vmatprep.mubr.bf16.mxu0 %v1361_v0 }
  0xb1   :  { %462 = vmatmul.mubr.bf16.gmra.mxu0 %v1249_v46 }
  0xb2   :  { %471 = vmatprep.mubr.bf16.mxu0 %v1361_v0 }
  0xb9   :  { %472 = vmatmul.mubr.bf16.gmra.mxu0 %v1250_v47 }
  0xba   :  { %481 = vmatprep.mubr.bf16.mxu0 %v1361_v0 }
  0xc1   :  { %482 = vmatmul.mubr.bf16.gmra.mxu0 %v1251_v48 }
 0x109   :  { %v333_v54 = vpop.f32.mrf.mxu0 }
 0x10a   :  { %v334_v61 = vadd.f32 %v333_v54, %v1426_v56 }
 0x10b   :  { %v335_v57 = vpop.f32.mrf.mxu0 }
 0x10c   :  { %v336_v59 = vadd.f32 %v335_v57, %v1424_v55  ;;  %v492_v4 = vmax.f32 %v334_v61, 0.0 }
 0x10d   :  { %v337_v58 = vpop.f32.mrf.mxu0 }
 0x10e   :  { %v338_v60 = vadd.f32 %v337_v58, %v1426_v56  ;;  %v493_v2 = vmax.f32 %v336_v59, 0.0 }
 0x10f   :  { %v339_v62 = vpop.f32.mrf.mxu0 }
 0x110   :  { %v340_v63 = vadd.f32 %v339_v62, %v1424_v55  ;;  %v494_v0 = vmax.f32 %v338_v60, 0.0 }
 0x111   :  { %v343_v1 = vpop.f32.mrf.mxu0 }
 0x112   :  { %v495_v3 = vmax.f32 %v340_v63, 0.0  ;;  %v556_v7 = vpack.c.bf16 %v494_v0, %v492_v4  ;;  %v344_v11 = vadd.f32 %v343_v1, %v1426_v56 }
 0x113   :  { %v345_v5 = vpop.f32.mrf.mxu0 }
 0x114   :  { %v557_v6 = vpack.c.bf16 %v495_v3, %v493_v2  ;;  %v346_v9 = vadd.f32 %v345_v5, %v1424_v55  ;;  %v496_v18 = vmax.f32 %v344_v11, 0.0 }
 0x115   :  { %v347_v8 = vpop.f32.mrf.mxu0 }
 0x116   :  { %v348_v10 = vadd.f32 %v347_v8, %v1426_v56  ;;  %760 = vmatprep.mubr.bf16.mxu1 %v557_v6  ;;  %v497_v16 = vmax.f32 %v346_v9, 0.0 }
 0x117   :  { %v349_v12 = vpop.f32.mrf.mxu0  ;;  %761 = vmatmul.mubr.bf16.vlgmr.msra.gmra.mxu1 %v556_v7 }
 0x118   :  { %v350_v13 = vadd.f32 %v349_v12, %v1424_v55  ;;  %v498_v14 = vmax.f32 %v348_v10, 0.0 }
 0x119   :  { %v353_v15 = vpop.f32.mrf.mxu0 }
 0x11a   :  { %v499_v17 = vmax.f32 %v350_v13, 0.0  ;;  %v558_v21 = vpack.c.bf16 %v498_v14, %v496_v18  ;;  %v354_v25 = vadd.f32 %v353_v15, %v1426_v56 }
 0x11b   :  { %v355_v19 = vpop.f32.mrf.mxu0 }
 0x11c   :  { %v559_v20 = vpack.c.bf16 %v499_v17, %v497_v16  ;;  %v356_v23 = vadd.f32 %v355_v19, %v1424_v55  ;;  %v500_v32 = vmax.f32 %v354_v25, 0.0 }
 0x11d   :  { %v357_v22 = vpop.f32.mrf.mxu0 }
 0x11e   :  { %v358_v24 = vadd.f32 %v357_v22, %v1426_v56  ;;  %768 = vmatprep.mubr.bf16.mxu1 %v559_v20  ;;  %v501_v30 = vmax.f32 %v356_v23, 0.0 }
 0x11f   :  { %v359_v26 = vpop.f32.mrf.mxu0  ;;  %769 = vmatmul.mubr.bf16.gmra.mxu1 %v558_v21 }
 0x120   :  { %v360_v27 = vadd.f32 %v359_v26, %v1424_v55  ;;  %v502_v28 = vmax.f32 %v358_v24, 0.0 }
 0x121   :  { %v363_v29 = vpop.f32.mrf.mxu0 }
 0x122   :  { %v503_v31 = vmax.f32 %v360_v27, 0.0  ;;  %v560_v35 = vpack.c.bf16 %v502_v28, %v500_v32  ;;  %v364_v39 = vadd.f32 %v363_v29, %v1426_v56 }
 0x123   :  { %v365_v33 = vpop.f32.mrf.mxu0 }
 0x124   :  { %v561_v34 = vpack.c.bf16 %v503_v31, %v501_v30  ;;  %v366_v37 = vadd.f32 %v365_v33, %v1424_v55  ;;  %v504_v46 = vmax.f32 %v364_v39, 0.0 }
 0x125   :  { %v367_v36 = vpop.f32.mrf.mxu0 }
 0x126   :  { %v368_v38 = vadd.f32 %v367_v36, %v1426_v56  ;;  %776 = vmatprep.mubr.bf16.mxu1 %v561_v34  ;;  %v505_v44 = vmax.f32 %v366_v37, 0.0 }
 0x127   :  { %v369_v40 = vpop.f32.mrf.mxu0  ;;  %777 = vmatmul.mubr.bf16.gmra.mxu1 %v560_v35 }
 0x128   :  { %v370_v41 = vadd.f32 %v369_v40, %v1424_v55  ;;  %v506_v42 = vmax.f32 %v368_v38, 0.0 }
 0x129   :  { %v373_v43 = vpop.f32.mrf.mxu0 }
 0x12a   :  { %v507_v45 = vmax.f32 %v370_v41, 0.0  ;;  %v562_v49 = vpack.c.bf16 %v506_v42, %v504_v46  ;;  %v374_v53 = vadd.f32 %v373_v43, %v1426_v56 }
 0x12b   :  { %v375_v47 = vpop.f32.mrf.mxu0 }
 0x12c   :  { %v563_v48 = vpack.c.bf16 %v507_v45, %v505_v44  ;;  %v376_v51 = vadd.f32 %v375_v47, %v1424_v55  ;;  %v508_v62 = vmax.f32 %v374_v53, 0.0 }
 0x12d   :  { %v377_v50 = vpop.f32.mrf.mxu0 }
 0x12e   :  { %v378_v52 = vadd.f32 %v377_v50, %v1426_v56  ;;  %784 = vmatprep.mubr.bf16.mxu1 %v563_v48  ;;  %v509_v60 = vmax.f32 %v376_v51, 0.0 }
 0x12f   :  { %v379_v54 = vpop.f32.mrf.mxu0  ;;  %785 = vmatmul.mubr.bf16.gmra.mxu1 %v562_v49 }
 0x130   :  { %v380_v57 = vadd.f32 %v379_v54, %v1424_v55  ;;  %v510_v58 = vmax.f32 %v378_v52, 0.0 }
 0x131   :  { %v383_v59 = vpop.f32.mrf.mxu0 }
 0x132   :  { %v511_v61 = vmax.f32 %v380_v57, 0.0  ;;  %v564_v1 = vpack.c.bf16 %v510_v58, %v508_v62  ;;  %v384_v5 = vadd.f32 %v383_v59, %v1426_v56 }
 0x133   :  { %v385_v63 = vpop.f32.mrf.mxu0 }
 0x134   :  { %v565_v0 = vpack.c.bf16 %v511_v61, %v509_v60  ;;  %v386_v3 = vadd.f32 %v385_v63, %v1424_v55  ;;  %v512_v12 = vmax.f32 %v384_v5, 0.0 }
 0x135   :  { %v387_v2 = vpop.f32.mrf.mxu0 }
 0x136   :  { %v388_v4 = vadd.f32 %v387_v2, %v1426_v56  ;;  %792 = vmatprep.mubr.bf16.mxu1 %v565_v0  ;;  %v513_v10 = vmax.f32 %v386_v3, 0.0 }
 0x137   :  { %v389_v6 = vpop.f32.mrf.mxu0  ;;  %793 = vmatmul.mubr.bf16.gmra.mxu1 %v564_v1 }
 0x138   :  { %v390_v7 = vadd.f32 %v389_v6, %v1424_v55  ;;  %v514_v8 = vmax.f32 %v388_v4, 0.0 }
 0x139   :  { %v393_v9 = vpop.f32.mrf.mxu0 }
 0x13a   :  { %v515_v11 = vmax.f32 %v390_v7, 0.0  ;;  %v566_v15 = vpack.c.bf16 %v514_v8, %v512_v12  ;;  %v394_v19 = vadd.f32 %v393_v9, %v1426_v56 }
 0x13b   :  { %v395_v13 = vpop.f32.mrf.mxu0 }
 0x13c   :  { %v567_v14 = vpack.c.bf16 %v515_v11, %v513_v10  ;;  %v396_v17 = vadd.f32 %v395_v13, %v1424_v55  ;;  %v516_v26 = vmax.f32 %v394_v19, 0.0 }
 0x13d   :  { %v397_v16 = vpop.f32.mrf.mxu0 }
 0x13e   :  { %v398_v18 = vadd.f32 %v397_v16, %v1426_v56  ;;  %800 = vmatprep.mubr.bf16.mxu1 %v567_v14  ;;  %v517_v24 = vmax.f32 %v396_v17, 0.0 }
 0x13f   :  { %v399_v20 = vpop.f32.mrf.mxu0  ;;  %801 = vmatmul.mubr.bf16.gmra.mxu1 %v566_v15 }
 0x140   :  { %v400_v21 = vadd.f32 %v399_v20, %v1424_v55  ;;  %v518_v22 = vmax.f32 %v398_v18, 0.0 }
 0x141   :  { %v403_v23 = vpop.f32.mrf.mxu0 }
 0x142   :  { %v519_v25 = vmax.f32 %v400_v21, 0.0  ;;  %v568_v29 = vpack.c.bf16 %v518_v22, %v516_v26  ;;  %v404_v33 = vadd.f32 %v403_v23, %v1426_v56 }
 0x143   :  { %v405_v27 = vpop.f32.mrf.mxu0 }
 0x144   :  { %v569_v28 = vpack.c.bf16 %v519_v25, %v517_v24  ;;  %v406_v31 = vadd.f32 %v405_v27, %v1424_v55  ;;  %v520_v40 = vmax.f32 %v404_v33, 0.0 }
 0x145   :  { %v407_v30 = vpop.f32.mrf.mxu0 }
 0x146   :  { %v408_v32 = vadd.f32 %v407_v30, %v1426_v56  ;;  %808 = vmatprep.mubr.bf16.mxu1 %v569_v28  ;;  %v521_v38 = vmax.f32 %v406_v31, 0.0 }
 0x147   :  { %v409_v34 = vpop.f32.mrf.mxu0  ;;  %809 = vmatmul.mubr.bf16.gmra.mxu1 %v568_v29 }
 0x148   :  { %v410_v35 = vadd.f32 %v409_v34, %v1424_v55  ;;  %v522_v36 = vmax.f32 %v408_v32, 0.0 }
 0x149   :  { %v413_v37 = vpop.f32.mrf.mxu0 }
 0x14a   :  { %v523_v39 = vmax.f32 %v410_v35, 0.0  ;;  %v570_v43 = vpack.c.bf16 %v522_v36, %v520_v40  ;;  %v414_v47 = vadd.f32 %v413_v37, %v1426_v56 }
 0x14b   :  { %v415_v41 = vpop.f32.mrf.mxu0 }
 0x14c   :  { %v571_v42 = vpack.c.bf16 %v523_v39, %v521_v38  ;;  %v416_v45 = vadd.f32 %v415_v41, %v1424_v55  ;;  %v524_v54 = vmax.f32 %v414_v47, 0.0 }
 0x14d   :  { %v417_v44 = vpop.f32.mrf.mxu0 }
 0x14e   :  { %v418_v46 = vadd.f32 %v417_v44, %v1426_v56  ;;  %816 = vmatprep.mubr.bf16.mxu1 %v571_v42  ;;  %v525_v52 = vmax.f32 %v416_v45, 0.0 }
 0x14f   :  { %v419_v48 = vpop.f32.mrf.mxu0  ;;  %817 = vmatmul.mubr.bf16.gmra.mxu1 %v570_v43 }
 0x150   :  { %v420_v49 = vadd.f32 %v419_v48, %v1424_v55  ;;  %v526_v50 = vmax.f32 %v418_v46, 0.0 }
 0x151   :  { %v423_v51 = vpop.f32.mrf.mxu0 }
 0x152   :  { %v527_v53 = vmax.f32 %v420_v49, 0.0  ;;  %v572_v59 = vpack.c.bf16 %v526_v50, %v524_v54  ;;  %v424_v63 = vadd.f32 %v423_v51, %v1426_v56 }
 0x153   :  { %v425_v57 = vpop.f32.mrf.mxu0 }
 0x154   :  { %v573_v58 = vpack.c.bf16 %v527_v53, %v525_v52  ;;  %v426_v61 = vadd.f32 %v425_v57, %v1424_v55  ;;  %v528_v6 = vmax.f32 %v424_v63, 0.0 }
 0x155   :  { %v427_v60 = vpop.f32.mrf.mxu0 }
 0x156   :  { %v428_v62 = vadd.f32 %v427_v60, %v1426_v56  ;;  %824 = vmatprep.mubr.bf16.mxu1 %v573_v58  ;;  %v529_v4 = vmax.f32 %v426_v61, 0.0 }
 0x157   :  { %v429_v0 = vpop.f32.mrf.mxu0  ;;  %825 = vmatmul.mubr.bf16.gmra.mxu1 %v572_v59 }
 0x158   :  { %v430_v1 = vadd.f32 %v429_v0, %v1424_v55  ;;  %v530_v2 = vmax.f32 %v428_v62, 0.0 }
 0x159   :  { %v433_v3 = vpop.f32.mrf.mxu0 }
 0x15a   :  { %v531_v5 = vmax.f32 %v430_v1, 0.0  ;;  %v574_v9 = vpack.c.bf16 %v530_v2, %v528_v6  ;;  %v434_v13 = vadd.f32 %v433_v3, %v1426_v56 }
 0x15b   :  { %v435_v7 = vpop.f32.mrf.mxu0 }
 0x15c   :  { %v575_v8 = vpack.c.bf16 %v531_v5, %v529_v4  ;;  %v436_v11 = vadd.f32 %v435_v7, %v1424_v55  ;;  %v532_v20 = vmax.f32 %v434_v13, 0.0 }
 0x15d   :  { %v437_v10 = vpop.f32.mrf.mxu0 }
 0x15e   :  { %v438_v12 = vadd.f32 %v437_v10, %v1426_v56  ;;  %832 = vmatprep.mubr.bf16.mxu1 %v575_v8  ;;  %v533_v18 = vmax.f32 %v436_v11, 0.0 }
 0x15f   :  { %v439_v14 = vpop.f32.mrf.mxu0  ;;  %833 = vmatmul.mubr.bf16.gmra.mxu1 %v574_v9 }
 0x160   :  { %v440_v15 = vadd.f32 %v439_v14, %v1424_v55  ;;  %v534_v16 = vmax.f32 %v438_v12, 0.0 }
 0x161   :  { %v443_v17 = vpop.f32.mrf.mxu0 }
 0x162   :  { %v535_v19 = vmax.f32 %v440_v15, 0.0  ;;  %v576_v23 = vpack.c.bf16 %v534_v16, %v532_v20  ;;  %v444_v27 = vadd.f32 %v443_v17, %v1426_v56 }
 0x163   :  { %v445_v21 = vpop.f32.mrf.mxu0 }
 0x164   :  { %v577_v22 = vpack.c.bf16 %v535_v19, %v533_v18  ;;  %v446_v25 = vadd.f32 %v445_v21, %v1424_v55  ;;  %v536_v34 = vmax.f32 %v444_v27, 0.0 }
 0x165   :  { %v447_v24 = vpop.f32.mrf.mxu0 }
 0x166   :  { %v448_v26 = vadd.f32 %v447_v24, %v1426_v56  ;;  %840 = vmatprep.mubr.bf16.mxu1 %v577_v22  ;;  %v537_v32 = vmax.f32 %v446_v25, 0.0 }
 0x167   :  { %v449_v28 = vpop.f32.mrf.mxu0  ;;  %841 = vmatmul.mubr.bf16.gmra.mxu1 %v576_v23 }
 0x168   :  { %v450_v29 = vadd.f32 %v449_v28, %v1424_v55  ;;  %v538_v30 = vmax.f32 %v448_v26, 0.0 }
 0x169   :  { %v453_v31 = vpop.f32.mrf.mxu0 }
 0x16a   :  { %v539_v33 = vmax.f32 %v450_v29, 0.0  ;;  %v578_v37 = vpack.c.bf16 %v538_v30, %v536_v34  ;;  %v454_v41 = vadd.f32 %v453_v31, %v1426_v56  ;;  %v1495_v31 = vld [vmem:[%s1539_s4] ss:$0 sm:$0xff]  ;;  %s1362_s4 = smov [#allocation8]  }
 0x16b   :  { %v455_v35 = vpop.f32.mrf.mxu0  ;;  %s1029_s12 = sshll.u32 %s1362_s4, 4  ;;  %s1030_s12 = int_to_ptr.vmem [resolvable:$true] %s1029_s12 }
 0x16c   :  { %v579_v36 = vpack.c.bf16 %v539_v33, %v537_v32  ;;  %v456_v39 = vadd.f32 %v455_v35, %v1424_v55  ;;  %v540_v48 = vmax.f32 %v454_v41, 0.0  ;;  %s1328_s13 = scalar_lea.vmem %s1030_s12, 4096  ;;  %p1333_p2 = scmp.lt.s32.totalorder %s1030_s12, %s1030_s12 }
 0x16d   :  { %v457_v38 = vpop.f32.mrf.mxu0  ;;  %p1329_p1 = scmp.ne.s32.totalorder %s1030_s12, %s1328_s13  ;;  %p1334_p3 = scmp.lt.s32.totalorder %s1328_s13, %s1328_s13 }
 0x16e   :  { %v458_v40 = vadd.f32 %v457_v38, %v1426_v56  ;;  %848 = vmatprep.mubr.bf16.mxu1 %v579_v36  ;;  %v541_v46 = vmax.f32 %v456_v39, 0.0 }
 0x16f   :  { %v459_v42 = vpop.f32.mrf.mxu0  ;;  %849 = vmatmul.mubr.bf16.gmra.mxu1 %v578_v37  ;;  %p1335_p4 = por %p1334_p3, %p1333_p2 }
 0x170   :  { %v460_v43 = vadd.f32 %v459_v42, %v1424_v55  ;;  %v542_v44 = vmax.f32 %v458_v40, 0.0 }
 0x171   :  { %v463_v45 = vpop.f32.mrf.mxu0  ;;  %p1336_p5 = pnand %p1335_p4, %p1329_p1 }
 0x172   :  { %v543_v47 = vmax.f32 %v460_v43, 0.0  ;;  %v580_v51 = vpack.c.bf16 %v542_v44, %v540_v48  ;;  %v464_v57 = vadd.f32 %v463_v45, %v1426_v56 }
 0x173   :  { %v465_v49 = vpop.f32.mrf.mxu0 }
 0x174   :  { %v581_v50 = vpack.c.bf16 %v543_v47, %v541_v46  ;;  %v466_v53 = vadd.f32 %v465_v49, %v1424_v55  ;;  %v544_v0 = vmax.f32 %v464_v57, 0.0 }
 0x175   :  { %v467_v52 = vpop.f32.mrf.mxu0 }
 0x176   :  { %v468_v54 = vadd.f32 %v467_v52, %v1426_v56  ;;  %856 = vmatprep.mubr.bf16.mxu1 %v581_v50  ;;  %v545_v62 = vmax.f32 %v466_v53, 0.0 }
 0x177   :  { %v469_v58 = vpop.f32.mrf.mxu0  ;;  %857 = vmatmul.mubr.bf16.gmra.mxu1 %v580_v51 }
 0x178   :  { %v470_v59 = vadd.f32 %v469_v58, %v1424_v55  ;;  %v546_v60 = vmax.f32 %v468_v54, 0.0 }
 0x179   :  { %v473_v61 = vpop.f32.mrf.mxu0 }
 0x17a   :  { %v547_v63 = vmax.f32 %v470_v59, 0.0  ;;  %v582_v3 = vpack.c.bf16 %v546_v60, %v544_v0  ;;  %v474_v7 = vadd.f32 %v473_v61, %v1426_v56 }
 0x17b   :  { %v475_v1 = vpop.f32.mrf.mxu0 }
 0x17c   :  { %v583_v2 = vpack.c.bf16 %v547_v63, %v545_v62  ;;  %v476_v5 = vadd.f32 %v475_v1, %v1424_v55  ;;  %v548_v14 = vmax.f32 %v474_v7, 0.0 }
 0x17d   :  { %v477_v4 = vpop.f32.mrf.mxu0 }
 0x17e   :  { %v478_v6 = vadd.f32 %v477_v4, %v1426_v56  ;;  %864 = vmatprep.mubr.bf16.mxu1 %v583_v2  ;;  %v549_v12 = vmax.f32 %v476_v5, 0.0 }
 0x17f   :  { %v479_v8 = vpop.f32.mrf.mxu0  ;;  %865 = vmatmul.mubr.bf16.gmra.mxu1 %v582_v3 }
 0x180   :  { %v480_v9 = vadd.f32 %v479_v8, %v1424_v55  ;;  %v550_v10 = vmax.f32 %v478_v6, 0.0 }
 0x181   :  { %v483_v11 = vpop.f32.mrf.mxu0 }
 0x182   :  { %v551_v13 = vmax.f32 %v480_v9, 0.0  ;;  %v584_v17 = vpack.c.bf16 %v550_v10, %v548_v14  ;;  %v484_v21 = vadd.f32 %v483_v11, %v1426_v56 }
 0x183   :  { %v485_v15 = vpop.f32.mrf.mxu0 }
 0x184   :  { %v585_v16 = vpack.c.bf16 %v551_v13, %v549_v12  ;;  %v486_v19 = vadd.f32 %v485_v15, %v1424_v55  ;;  %v552_v27 = vmax.f32 %v484_v21, 0.0 }
 0x185   :  { %v487_v18 = vpop.f32.mrf.mxu0 }
 0x186   :  { %v488_v20 = vadd.f32 %v487_v18, %v1426_v56  ;;  %872 = vmatprep.mubr.bf16.mxu1 %v585_v16  ;;  %v553_v25 = vmax.f32 %v486_v19, 0.0 }
 0x187   :  { %v489_v22 = vpop.f32.mrf.mxu0  ;;  %873 = vmatmul.mubr.bf16.gmra.mxu1 %v584_v17 }
 0x188   :  { %v490_v23 = vadd.f32 %v489_v22, %v1424_v55  ;;  %v554_v24 = vmax.f32 %v488_v20, 0.0 }
 0x18a   :  { %v555_v26 = vmax.f32 %v490_v23, 0.0  ;;  %v586_v29 = vpack.c.bf16 %v554_v24, %v552_v27 }
 0x18c   :  { %v587_v28 = vpack.c.bf16 %v555_v26, %v553_v25 }
 0x18e   :  { %880 = vmatprep.mubr.bf16.mxu1 %v587_v28 }
 0x18f   :  { %881 = vmatmul.mubr.bf16.gmra.mxu1 %v586_v29 }
 0x1d7   :  { %v1107_v30 = vpop.f32.mrf.mxu1 }
 0x1d9   :  { %v1108_v32 = vpop.f32.mrf.mxu1 }
 0x1da   :  { %v1109_v56 = vadd.f32 %v1108_v32, %v1107_v30 }
 0x1db   :  { %v1110_v33 = vpop.f32.mrf.mxu1 }
 0x1dc   :  { %v763_v34 = vadd.f32 %v1109_v56, %v1495_v31 }
 0x1dd   :  { %v1111_v55 = vpop.f32.mrf.mxu1 }
 0x1de   :  { %892 = vst [vmem:[#allocation8] sm:$0xff] %v763_v34  ;;  %v1112_v35 = vadd.f32 %v1111_v55, %v1110_v33 }
 0x1df   :  { %v1113_v36 = vpop.f32.mrf.mxu1 }
 0x1e0   :  { %v766_v37 = vadd.f32 %v1112_v35, %v1495_v31 }
 0x1e1   :  { %v1114_v38 = vpop.f32.mrf.mxu1 }
 0x1e2   :  { %893 = vst [vmem:[#allocation8 + $0x8] sm:$0xff] %v766_v37  ;;  %v1115_v39 = vadd.f32 %v1114_v38, %v1113_v36 }
 0x1e3   :  { %v1116_v40 = vpop.f32.mrf.mxu1 }
 0x1e4   :  { %v771_v41 = vadd.f32 %v1115_v39, %v1495_v31 }
 0x1e5   :  { %v1117_v42 = vpop.f32.mrf.mxu1 }
 0x1e6   :  { %894 = vst [vmem:[#allocation8 + $0x10] sm:$0xff] %v771_v41  ;;  %v1118_v43 = vadd.f32 %v1117_v42, %v1116_v40 }
 0x1e7   :  { %v1119_v44 = vpop.f32.mrf.mxu1 }
 0x1e8   :  { %v774_v45 = vadd.f32 %v1118_v43, %v1495_v31 }
 0x1e9   :  { %v1120_v46 = vpop.f32.mrf.mxu1 }
 0x1ea   :  { %895 = vst [vmem:[#allocation8 + $0x18] sm:$0xff] %v774_v45  ;;  %v1121_v47 = vadd.f32 %v1120_v46, %v1119_v44 }
 0x1eb   :  { %v1122_v48 = vpop.f32.mrf.mxu1 }
 0x1ec   :  { %v779_v49 = vadd.f32 %v1121_v47, %v1495_v31 }
 0x1ed   :  { %v1123_v50 = vpop.f32.mrf.mxu1 }
 0x1ee   :  { %896 = vst [vmem:[#allocation8 + $0x20] sm:$0xff] %v779_v49  ;;  %v1124_v51 = vadd.f32 %v1123_v50, %v1122_v48 }
 0x1ef   :  { %v1125_v52 = vpop.f32.mrf.mxu1 }
 0x1f0   :  { %v782_v53 = vadd.f32 %v1124_v51, %v1495_v31 }
 0x1f1   :  { %v1126_v54 = vpop.f32.mrf.mxu1 }
 0x1f2   :  { %897 = vst [vmem:[#allocation8 + $0x28] sm:$0xff] %v782_v53  ;;  %v1127_v57 = vadd.f32 %v1126_v54, %v1125_v52 }
 0x1f3   :  { %v1128_v58 = vpop.f32.mrf.mxu1 }
 0x1f4   :  { %v787_v59 = vadd.f32 %v1127_v57, %v1495_v31 }
 0x1f5   :  { %v1129_v60 = vpop.f32.mrf.mxu1 }
 0x1f6   :  { %898 = vst [vmem:[#allocation8 + $0x30] sm:$0xff] %v787_v59  ;;  %v1130_v61 = vadd.f32 %v1129_v60, %v1128_v58 }
 0x1f7   :  { %v1131_v62 = vpop.f32.mrf.mxu1 }
 0x1f8   :  { %v790_v63 = vadd.f32 %v1130_v61, %v1495_v31 }
 0x1f9   :  { %v1132_v0 = vpop.f32.mrf.mxu1 }
 0x1fa   :  { %899 = vst [vmem:[#allocation8 + $0x38] sm:$0xff] %v790_v63  ;;  %v1133_v1 = vadd.f32 %v1132_v0, %v1131_v62 }
 0x1fb   :  { %v1134_v2 = vpop.f32.mrf.mxu1 }
 0x1fc   :  { %v795_v3 = vadd.f32 %v1133_v1, %v1495_v31 }
 0x1fd   :  { %v1135_v4 = vpop.f32.mrf.mxu1 }
 0x1fe   :  { %900 = vst [vmem:[#allocation8 + $0x40] sm:$0xff] %v795_v3  ;;  %v1136_v5 = vadd.f32 %v1135_v4, %v1134_v2 }
 0x1ff   :  { %v1137_v6 = vpop.f32.mrf.mxu1 }
 0x200   :  { %v798_v7 = vadd.f32 %v1136_v5, %v1495_v31 }
 0x201   :  { %v1138_v8 = vpop.f32.mrf.mxu1 }
 0x202   :  { %901 = vst [vmem:[#allocation8 + $0x48] sm:$0xff] %v798_v7  ;;  %v1139_v9 = vadd.f32 %v1138_v8, %v1137_v6 }
 0x203   :  { %v1140_v10 = vpop.f32.mrf.mxu1 }
 0x204   :  { %v803_v11 = vadd.f32 %v1139_v9, %v1495_v31 }
 0x205   :  { %v1141_v12 = vpop.f32.mrf.mxu1 }
 0x206   :  { %902 = vst [vmem:[#allocation8 + $0x50] sm:$0xff] %v803_v11  ;;  %v1142_v13 = vadd.f32 %v1141_v12, %v1140_v10 }
 0x207   :  { %v1143_v14 = vpop.f32.mrf.mxu1 }
 0x208   :  { %v806_v15 = vadd.f32 %v1142_v13, %v1495_v31 }
 0x209   :  { %v1144_v16 = vpop.f32.mrf.mxu1 }
 0x20a   :  { %903 = vst [vmem:[#allocation8 + $0x58] sm:$0xff] %v806_v15  ;;  %v1145_v17 = vadd.f32 %v1144_v16, %v1143_v14 }
 0x20b   :  { %v1146_v18 = vpop.f32.mrf.mxu1 }
 0x20c   :  { %v811_v19 = vadd.f32 %v1145_v17, %v1495_v31 }
 0x20d   :  { %v1147_v20 = vpop.f32.mrf.mxu1 }
 0x20e   :  { %904 = vst [vmem:[#allocation8 + $0x60] sm:$0xff] %v811_v19  ;;  %v1148_v21 = vadd.f32 %v1147_v20, %v1146_v18 }
 0x20f   :  { %v1149_v22 = vpop.f32.mrf.mxu1 }
 0x210   :  { %v814_v23 = vadd.f32 %v1148_v21, %v1495_v31 }
 0x211   :  { %v1150_v24 = vpop.f32.mrf.mxu1 }
 0x212   :  { %905 = vst [vmem:[#allocation8 + $0x68] sm:$0xff] %v814_v23  ;;  %v1151_v25 = vadd.f32 %v1150_v24, %v1149_v22 }
 0x213   :  { %v1152_v26 = vpop.f32.mrf.mxu1 }
 0x214   :  { %v819_v27 = vadd.f32 %v1151_v25, %v1495_v31 }
 0x215   :  { %v1153_v28 = vpop.f32.mrf.mxu1 }
 0x216   :  { %906 = vst [vmem:[#allocation8 + $0x70] sm:$0xff] %v819_v27  ;;  %v1154_v29 = vadd.f32 %v1153_v28, %v1152_v26 }
 0x217   :  { %v1155_v30 = vpop.f32.mrf.mxu1 }
 0x218   :  { %v822_v32 = vadd.f32 %v1154_v29, %v1495_v31 }
 0x219   :  { %v1156_v56 = vpop.f32.mrf.mxu1 }
 0x21a   :  { %907 = vst [vmem:[#allocation8 + $0x78] sm:$0xff] %v822_v32  ;;  %v1157_v33 = vadd.f32 %v1156_v56, %v1155_v30 }
 0x21b   :  { %v1158_v34 = vpop.f32.mrf.mxu1 }
 0x21c   :  { %v827_v55 = vadd.f32 %v1157_v33, %v1495_v31 }
 0x21d   :  { %v1159_v35 = vpop.f32.mrf.mxu1 }
 0x21e   :  { %908 = vst [vmem:[#allocation8 + $0x80] sm:$0xff] %v827_v55  ;;  %v1160_v36 = vadd.f32 %v1159_v35, %v1158_v34 }
 0x21f   :  { %v1161_v37 = vpop.f32.mrf.mxu1 }
 0x220   :  { %v830_v38 = vadd.f32 %v1160_v36, %v1495_v31 }
 0x221   :  { %v1162_v39 = vpop.f32.mrf.mxu1 }
 0x222   :  { %909 = vst [vmem:[#allocation8 + $0x88] sm:$0xff] %v830_v38  ;;  %v1163_v40 = vadd.f32 %v1162_v39, %v1161_v37 }
 0x223   :  { %v1164_v41 = vpop.f32.mrf.mxu1 }
 0x224   :  { %v835_v42 = vadd.f32 %v1163_v40, %v1495_v31 }
 0x225   :  { %v1165_v43 = vpop.f32.mrf.mxu1 }
 0x226   :  { %910 = vst [vmem:[#allocation8 + $0x90] sm:$0xff] %v835_v42  ;;  %v1166_v44 = vadd.f32 %v1165_v43, %v1164_v41 }
 0x227   :  { %v1167_v45 = vpop.f32.mrf.mxu1 }
 0x228   :  { %v838_v46 = vadd.f32 %v1166_v44, %v1495_v31 }
 0x229   :  { %v1168_v47 = vpop.f32.mrf.mxu1 }
 0x22a   :  { %911 = vst [vmem:[#allocation8 + $0x98] sm:$0xff] %v838_v46  ;;  %v1169_v48 = vadd.f32 %v1168_v47, %v1167_v45 }
 0x22b   :  { %v1170_v49 = vpop.f32.mrf.mxu1 }
 0x22c   :  { %v843_v50 = vadd.f32 %v1169_v48, %v1495_v31 }
 0x22d   :  { %v1171_v51 = vpop.f32.mrf.mxu1 }
 0x22e   :  { %912 = vst [vmem:[#allocation8 + $0xa0] sm:$0xff] %v843_v50  ;;  %v1172_v52 = vadd.f32 %v1171_v51, %v1170_v49 }
 0x22f   :  { %v1173_v53 = vpop.f32.mrf.mxu1 }
 0x230   :  { %v846_v54 = vadd.f32 %v1172_v52, %v1495_v31 }
 0x231   :  { %v1174_v57 = vpop.f32.mrf.mxu1 }
 0x232   :  { %913 = vst [vmem:[#allocation8 + $0xa8] sm:$0xff] %v846_v54  ;;  %v1175_v58 = vadd.f32 %v1174_v57, %v1173_v53 }
 0x233   :  { %v1176_v59 = vpop.f32.mrf.mxu1 }
 0x234   :  { %v851_v60 = vadd.f32 %v1175_v58, %v1495_v31 }
 0x235   :  { %v1177_v61 = vpop.f32.mrf.mxu1 }
 0x236   :  { %914 = vst [vmem:[#allocation8 + $0xb0] sm:$0xff] %v851_v60  ;;  %v1178_v62 = vadd.f32 %v1177_v61, %v1176_v59 }
 0x237   :  { %v1179_v63 = vpop.f32.mrf.mxu1 }
 0x238   :  { %v854_v0 = vadd.f32 %v1178_v62, %v1495_v31 }
 0x239   :  { %v1180_v1 = vpop.f32.mrf.mxu1 }
 0x23a   :  { %915 = vst [vmem:[#allocation8 + $0xb8] sm:$0xff] %v854_v0  ;;  %v1181_v2 = vadd.f32 %v1180_v1, %v1179_v63 }
 0x23b   :  { %v1182_v3 = vpop.f32.mrf.mxu1 }
 0x23c   :  { %v859_v4 = vadd.f32 %v1181_v2, %v1495_v31 }
 0x23d   :  { %v1183_v5 = vpop.f32.mrf.mxu1 }
 0x23e   :  { %916 = vst [vmem:[#allocation8 + $0xc0] sm:$0xff] %v859_v4  ;;  %v1184_v6 = vadd.f32 %v1183_v5, %v1182_v3 }
 0x23f   :  { %v1185_v7 = vpop.f32.mrf.mxu1 }
 0x240   :  { %v862_v8 = vadd.f32 %v1184_v6, %v1495_v31 }
 0x241   :  { %v1186_v9 = vpop.f32.mrf.mxu1 }
 0x242   :  { %917 = vst [vmem:[#allocation8 + $0xc8] sm:$0xff] %v862_v8  ;;  %v1187_v10 = vadd.f32 %v1186_v9, %v1185_v7 }
 0x243   :  { %v1188_v11 = vpop.f32.mrf.mxu1 }
 0x244   :  { %v867_v12 = vadd.f32 %v1187_v10, %v1495_v31 }
 0x245   :  { %v1189_v13 = vpop.f32.mrf.mxu1 }
 0x246   :  { %918 = vst [vmem:[#allocation8 + $0xd0] sm:$0xff] %v867_v12  ;;  %v1190_v14 = vadd.f32 %v1189_v13, %v1188_v11 }
 0x247   :  { %v1191_v15 = vpop.f32.mrf.mxu1 }
 0x248   :  { %v870_v16 = vadd.f32 %v1190_v14, %v1495_v31 }
 0x249   :  { %v1192_v17 = vpop.f32.mrf.mxu1 }
 0x24a   :  { %919 = vst [vmem:[#allocation8 + $0xd8] sm:$0xff] %v870_v16  ;;  %v1193_v18 = vadd.f32 %v1192_v17, %v1191_v15 }
 0x24b   :  { %v1194_v19 = vpop.f32.mrf.mxu1 }
 0x24c   :  { %v875_v20 = vadd.f32 %v1193_v18, %v1495_v31 }
 0x24d   :  { %v1195_v21 = vpop.f32.mrf.mxu1 }
 0x24e   :  { %920 = vst [vmem:[#allocation8 + $0xe0] sm:$0xff] %v875_v20  ;;  %v1196_v22 = vadd.f32 %v1195_v21, %v1194_v19 }
 0x24f   :  { %v1197_v23 = vpop.f32.mrf.mxu1 }
 0x250   :  { %v878_v24 = vadd.f32 %v1196_v22, %v1495_v31 }
 0x251   :  { %v1198_v25 = vpop.f32.mrf.mxu1 }
 0x252   :  { %921 = vst [vmem:[#allocation8 + $0xe8] sm:$0xff] %v878_v24  ;;  %v1199_v26 = vadd.f32 %v1198_v25, %v1197_v23 }
 0x253   :  { %v1200_v27 = vpop.f32.mrf.mxu1 }
 0x254   :  { %v883_v28 = vadd.f32 %v1199_v26, %v1495_v31 }
 0x255   :  { %v1201_v29 = vpop.f32.mrf.mxu1 }
 0x256   :  { %922 = vst [vmem:[#allocation8 + $0xf0] sm:$0xff] %v883_v28  ;;  %v1202_v30 = vadd.f32 %v1201_v29, %v1200_v27 }
 0x258   :  { %v886_v32 = vadd.f32 %v1202_v30, %v1495_v31 }
 0x25a   :  { %923 = vst [vmem:[#allocation8 + $0xf8] sm:$0xff] %v886_v32 }
 0x25b   :  { %1339 = shalt.err (!%p1336_p5)
}
 0x25c   :  { %1035 = dma.vmem_to_hbm [thread:$0]  %s1030_s12, 4096, %s1540_s5, [#allocation4], %s1355_s21, %s1355_s21, %s1356_s22  }
 0x25d   :  { %1352 = dma.done.wait [#allocation4], 4096  }
 0x25e   :  { %1353 = vsyncadd [#allocation4], 4294963200 }
 0x25f   :  { %1039 = vsyncpa [#allocation3], 1 }
 0x260   :  { %1040 = vsyncpa [#allocation6], 1 }
 0x261   :  { %1041 = vsyncpa [#allocation4], 1 }

</bundles_post_ra>
